<compile_context>
chip_gen: v6e
topology: v6e:2x2x1
jax: 0.10.0
libtpu: 0.0.40
codegen_flags: <defaults>
</compile_context>

<pallas_src>
import functools

import jax
import jax.numpy as jnp
from jax.experimental import pallas as pl
from jax.experimental.pallas import tpu as pltpu

# Class weights from the PyTorch WEIGHT dict (deterministic "parameters").
WEIGHT = {
    'Background': 1e-10, 'BrainStem': 0.007, 'Chiasm': 0.3296,
    'Mandible': 0.0046, 'OpticNerve_L': 0.2619, 'OpticNerve_R': 0.3035,
    'Parotid_L': 0.0068, 'Parotid_R': 0.0065, 'Submandibular_L': 0.0374,
    'Submandibular_R': 0.0426,
}
NUM_CLASSES = len(WEIGHT)          # 10 = len(miccai.STRUCTURES) + 1
FOCAL_GAMMA = 2.0                  # MONAI FocalLoss default (gamma == 2 assumed below)
SMOOTH = 1e-5                      # MONAI Dice / GeneralizedDice smoothing

# Columns of the per-(sample, class) statistics emitted by the kernel.
_INTER, _PRED, _TARG, _NLL, _FOC, _BND = range(6)
NUM_STATS = 6

MAX_PIXEL_TILE = 16384             # lanes per grid step (multiple of 128)


def _loss_stats_kernel(x_ref, t_ref, d_ref, o_ref, acc_ref, *, n_inner):
    """Accumulate per-(sample, class) loss statistics over pixel tiles."""
    it = pl.program_id(2)          # inner pixel-tile index (sequential axis)

    @pl.when(it == 0)
    def _():
        acc_ref[...] = jnp.zeros_like(acc_ref)

    x = x_ref[0].astype(jnp.float32)          # (C, TP) logits
    labels = t_ref[0]                          # (1, TP) int32
    dist = d_ref[0].astype(jnp.float32)        # (C-1, TP) distance maps

    C, TP = x.shape

    # softmax / log-softmax over the class (sublane) axis
    m = jnp.max(x, axis=0, keepdims=True)
    z = x - m
    e = jnp.exp(z)
    s = jnp.sum(e, axis=0, keepdims=True)
    p = e * pl.reciprocal(s)                   # softmax probs (C, TP)
    logp = z - jnp.log(s)                      # log-softmax  (C, TP)

    cls = jax.lax.broadcasted_iota(jnp.int32, (C, TP), 0)
    onehot = (cls == labels).astype(jnp.float32)          # (C, TP)

    # --- Focal loss (MONAI BCE-with-logits form, gamma = 2) ---
    # Exact rewrite with 2 transcendentals + 1 reciprocal per class-pixel:
    #   zf  = -x*(2t-1),  a = exp(-|zf|)
    #   bce = softplus(zf) = max(zf, 0) + log(1 + a)
    #   exp(gamma*log_sigmoid(zf)) = sigmoid(zf)^2,
    #   sigmoid(zf) = where(zf >= 0, 1, a) / (1 + a)
    zf = x * (1.0 - 2.0 * onehot)
    a = jnp.exp(-jnp.abs(zf))
    r = pl.reciprocal(1.0 + a)
    bce = jnp.maximum(zf, 0.0) + jnp.log(1.0 + a)
    sig = jnp.where(zf >= 0.0, 1.0, a) * r
    focal = sig * sig * bce

    # --- per-class lane sums accumulated in VMEM scratch (no concat, no RMW
    #     on the output block; written out once at the last inner tile) ---
    acc_ref[:, _INTER:_INTER + 1] += jnp.sum(p * onehot, axis=1, keepdims=True)
    acc_ref[:, _PRED:_PRED + 1] += jnp.sum(p, axis=1, keepdims=True)
    acc_ref[:, _TARG:_TARG + 1] += jnp.sum(onehot, axis=1, keepdims=True)
    acc_ref[:, _NLL:_NLL + 1] += -jnp.sum(onehot * logp, axis=1, keepdims=True)
    acc_ref[:, _FOC:_FOC + 1] += jnp.sum(focal, axis=1, keepdims=True)
    # Boundary sums for foreground classes are stored in rows [0, C-1) of the
    # _BND column (row index = fg class - 1); the glue only consumes the total.
    acc_ref[:C - 1, _BND:_BND + 1] += jnp.sum(p[1:, :] * dist, axis=1,
                                              keepdims=True)

    @pl.when(it == n_inner - 1)
    def _():
        o_ref[0, 0] = acc_ref[...]


@functools.partial(jax.jit, static_argnames=("max_pixel_tile",))
def multiple_loss_forward(logits_nchw, target_nhw, dist_maps, *,
                          max_pixel_tile=MAX_PIXEL_TILE):
    """JAX/Pallas equivalent of MultipleLossWrapper(losses=ALL).forward."""
    N, C, H, W = logits_nchw.shape
    assert C == NUM_CLASSES
    assert max_pixel_tile >= 128
    P = H * W

    # Inputs stream in their native dtype (bf16 logits / dist_maps OK) and are
    # cast to f32 inside the kernel — no wrapper-side cast pass.
    x = logits_nchw.reshape(N, C, P)
    t = target_nhw.reshape(N, 1, P).astype(jnp.int32)
    d = dist_maps.reshape(N, C - 1, P)

    # ---- pixel-tile selection --------------------------------------------
    if P <= max_pixel_tile:
        tile, p_pad = P, P                       # single full-width tile
    else:
        tile = 0
        if P % 128 == 0:
            # largest multiple of 128 that divides P and fits the cap -> no pad
            cand = (max_pixel_tile // 128) * 128
            while cand >= 128:
                if P % cand == 0:
                    tile = cand
                    break
                cand -= 128
        if tile:
            p_pad = P
        else:
            tile = (max_pixel_tile // 128) * 128
            p_pad = pl.cdiv(P, tile) * tile

    n_pad = p_pad - P
    if n_pad:
        # Padding values chosen so padded lanes contribute zero to every
        # statistic except `pred` (softmax of constant logits is uniform, i.e.
        # exactly 1/C per class per padded lane), which is corrected below.
        x = jnp.pad(x, ((0, 0), (0, 0), (0, n_pad)), constant_values=-100.0)
        t = jnp.pad(t, ((0, 0), (0, 0), (0, n_pad)), constant_values=C)
        d = jnp.pad(d, ((0, 0), (0, 0), (0, n_pad)))

    n_tiles = p_pad // tile
    n_super = 1                                   # pixel super-blocks (megacore)
    for cand in (8, 4, 2):
        if n_tiles % cand == 0:
            n_super = cand
            break
    n_inner = n_tiles // n_super

    kernel = functools.partial(_loss_stats_kernel, n_inner=n_inner)

    stats = pl.pallas_call(
        kernel,
        out_shape=jax.ShapeDtypeStruct((N, n_super, C, NUM_STATS), jnp.float32),
        grid=(N, n_super, n_inner),
        in_specs=[
            pl.BlockSpec((1, C, tile),
                         lambda b, s, it: (b, 0, s * n_inner + it)),   # logits
            pl.BlockSpec((1, 1, tile),
                         lambda b, s, it: (b, 0, s * n_inner + it)),   # target
            pl.BlockSpec((1, C - 1, tile),
                         lambda b, s, it: (b, 0, s * n_inner + it)),   # dist maps
        ],
        out_specs=pl.BlockSpec((1, 1, C, NUM_STATS),
                               lambda b, s, it: (b, s, 0, 0)),
        scratch_shapes=[pltpu.VMEM((C, NUM_STATS), jnp.float32)],
        compiler_params=pltpu.CompilerParams(
            dimension_semantics=("parallel", "parallel", "arbitrary"),
            vmem_limit_bytes=48 * 1024 * 1024),
    )(x, t, d)

    stats = jnp.sum(stats, axis=1)               # (N, C, NUM_STATS)
    inter = stats[:, :, _INTER]
    pred = stats[:, :, _PRED]
    targ = stats[:, :, _TARG]
    nll = stats[:, :, _NLL]
    foc = stats[:, :, _FOC]
    bnd = stats[:, :, _BND]

    if n_pad:
        # Exact correction: each padded lane added 1/C to every class's pred.
        pred = pred - n_pad / C

    w = jnp.asarray(list(WEIGHT.values()), jnp.float32)        # (C,)

    values = {}
    # F.cross_entropy, reduction='mean'
    values['CrossEntropy'] = jnp.sum(nll) / (N * P)
    # F.cross_entropy with class weights: weighted mean
    values['WeightedCrossEntropy'] = jnp.sum(nll * w) / jnp.sum(targ * w)
    # MONAI FocalLoss(reduction='mean') over (N, C, H*W)
    values['Focal'] = jnp.sum(foc) / (N * C * P)

    # MONAI DiceLoss(include_background=False, softmax, to_onehot_y, 'mean')
    inter_fg, pred_fg, targ_fg = inter[:, 1:], pred[:, 1:], targ[:, 1:]
    dice = 1.0 - (2.0 * inter_fg + SMOOTH) / (pred_fg + targ_fg + SMOOTH)
    values['Dice'] = jnp.mean(dice)

    # MONAI GeneralizedDiceLoss(include_background=False, w_type='square')
    w_gd = 1.0 / (targ_fg * targ_fg)
    inf_mask = jnp.isinf(w_gd)
    w_fin = jnp.where(inf_mask, 0.0, w_gd)
    w_gd = w_fin + inf_mask.astype(jnp.float32) * jnp.max(
        w_fin, axis=1, keepdims=True)
    numer = 2.0 * jnp.sum(inter_fg * w_gd, axis=1) + SMOOTH
    denom = jnp.sum((pred_fg + targ_fg) * w_gd, axis=1) + SMOOTH
    values['GeneralizedDice'] = jnp.mean(1.0 - numer / denom)

    # BoundaryLossWrapper(reduction='mean')
    values['Boundary'] = jnp.sum(bnd) / (N * (C - 1) * P)
    return values


def _reference(logits, target, dist_maps):
    """Pure-JAX reference (same math, no Pallas) for sanity checking."""
    N, C, H, W = logits.shape
    P = H * W
    x = logits.reshape(N, C, P).astype(jnp.float32)
    t = target.reshape(N, P).astype(jnp.int32)
    d = dist_maps.reshape(N, C - 1, P).astype(jnp.float32)
    onehot = jax.nn.one_hot(t, C, dtype=jnp.float32).transpose(0, 2, 1)  # (N,C,P)
    logp = jax.nn.log_softmax(x, axis=1)
    p = jnp.exp(logp)
    w = jnp.asarray(list(WEIGHT.values()), jnp.float32)

    ref = {}
    nll = -jnp.sum(onehot * logp, axis=1)                       # (N, P)
    ref['CrossEntropy'] = jnp.mean(nll)
    wpix = w[t]
    ref['WeightedCrossEntropy'] = jnp.sum(wpix * nll) / jnp.sum(wpix)
    max_val = jnp.maximum(-x, 0.0)
    bce = x - x * onehot + max_val + jnp.log(jnp.exp(-max_val)
                                             + jnp.exp(-x - max_val))
    log_sig = jax.nn.log_sigmoid(-x * (onehot * 2.0 - 1.0))
    ref['Focal'] = jnp.mean(jnp.exp(log_sig * FOCAL_GAMMA) * bce)
    inter = jnp.sum(p * onehot, axis=2)[:, 1:]
    pred = jnp.sum(p, axis=2)[:, 1:]
    targ = jnp.sum(onehot, axis=2)[:, 1:]
    ref['Dice'] = jnp.mean(1.0 - (2 * inter + SMOOTH) / (pred + targ + SMOOTH))
    w_gd = 1.0 / (targ * targ)
    infm = jnp.isinf(w_gd)
    w_fin = jnp.where(infm, 0.0, w_gd)
    w_gd = w_fin + infm.astype(jnp.float32) * jnp.max(w_fin, 1, keepdims=True)
    ref['GeneralizedDice'] = jnp.mean(
        1.0 - (2 * jnp.sum(inter * w_gd, 1) + SMOOTH)
        / (jnp.sum((pred + targ) * w_gd, 1) + SMOOTH))
    ref['Boundary'] = jnp.mean(p[:, 1:, :] * d)
    return ref


if __name__ == "__main__":
    key = jax.random.PRNGKey(0)
    k1, k2, k3, k4, k5, k6 = jax.random.split(key, 6)
    N, C = 2, NUM_CLASSES

    # Case 1: small image, single full-width tile.
    H, W = 16, 16
    logits = jax.random.normal(k1, (N, C, H, W), jnp.float32)
    target = jax.random.randint(k2, (N, H, W), 0, C, jnp.int32)
    dist_maps = jax.random.normal(k3, (N, C - 1, H, W), jnp.float32)

    out = jax.block_until_ready(multiple_loss_forward(logits, target, dist_maps))
    ref = _reference(logits, target, dist_maps)
    for name in out:
        assert jnp.allclose(out[name], ref[name], rtol=2e-4, atol=3e-5), (
            name, float(out[name]), float(ref[name]))

    # Case 2: exercises pixel tiling, padding and the super-block axis
    # (tile forced to 128 so P=180 needs a padded tile and 2 super-blocks).
    H2, W2 = 9, 20
    logits2 = jax.random.normal(k4, (N, C, H2, W2), jnp.float32)
    target2 = jax.random.randint(k5, (N, H2, W2), 0, C, jnp.int32)
    dist2 = jax.random.normal(k6, (N, C - 1, H2, W2), jnp.float32)

    out2 = jax.block_until_ready(
        multiple_loss_forward(logits2, target2, dist2, max_pixel_tile=128))
    ref2 = _reference(logits2, target2, dist2)
    for name in out2:
        assert jnp.allclose(out2[name], ref2[name], rtol=2e-4, atol=3e-5), (
            name, float(out2[name]), float(ref2[name]))

    print("KERNEL_OK")
</pallas_src>

<mosaic_0001>
module attributes {stable_mosaic.version = 11 : i64} {
  func.func @_loss_stats_kernel(%arg0: i32, %arg1: i32, %arg2: i32, %arg3: memref<1x10x256xf32, #tpu.memory_space<vmem>>, %arg4: memref<1x1x256xi32, #tpu.memory_space<vmem>>, %arg5: memref<1x9x256xf32, #tpu.memory_space<vmem>>, %arg6: memref<1x1x10x6xf32, #tpu.memory_space<vmem>>, %arg7: memref<10x6xf32, #tpu.memory_space<vmem>>) attributes {dimension_semantics = [#tpu.dimension_semantics<parallel>, #tpu.dimension_semantics<parallel>, #tpu.dimension_semantics<arbitrary>], iteration_bounds = array<i64: 2, 1, 1>, scalar_prefetch = 0 : i64, scratch_operands = 1 : i64, tpu.core_type = #tpu.core_type<tc>, window_params = [{transform_indices = @transform_0, window_bounds = array<i64: 1, 10, 256>}, {transform_indices = @transform_1, window_bounds = array<i64: 1, 1, 256>}, {transform_indices = @transform_2, window_bounds = array<i64: 1, 9, 256>}, {transform_indices = @transform_3, window_bounds = array<i64: 1, 1, 10, 6>}]} {
    %c0_i32 = arith.constant 0 : i32
    %0 = arith.cmpi eq, %arg2, %c0_i32 : i32
    %1 = arith.extui %0 : i1 to i32
    %c0_i32_0 = arith.constant 0 : i32
    %2 = arith.cmpi ne, %1, %c0_i32_0 : i32
    scf.if %2 {
      %cst_46 = arith.constant 0.000000e+00 : f32
      %91 = vector.broadcast %cst_46 : f32 to vector<10x6xf32>
      %c0_47 = arith.constant 0 : index
      %c0_48 = arith.constant 0 : index
      %92 = vector.load %arg7[%c0_47, %c0_48] : memref<10x6xf32, #tpu.memory_space<vmem>>, vector<10x6xf32>
      tpu.vector_store %arg7[%c0_47, %c0_48], %91 {strides = array<i32>} : memref<10x6xf32, #tpu.memory_space<vmem>>, vector<10x6xf32>,
    } else {
    }
    %c0 = arith.constant 0 : index
    %c0_1 = arith.constant 0 : index
    %c0_2 = arith.constant 0 : index
    %3 = vector.load %arg3[%c0, %c0_1, %c0_2] : memref<1x10x256xf32, #tpu.memory_space<vmem>>, vector<1x10x256xf32>
    %4 = vector.shape_cast %3 : vector<1x10x256xf32> to vector<10x256xf32>
    %c0_3 = arith.constant 0 : index
    %c0_4 = arith.constant 0 : index
    %c0_5 = arith.constant 0 : index
    %5 = vector.load %arg4[%c0_3, %c0_4, %c0_5] : memref<1x1x256xi32, #tpu.memory_space<vmem>>, vector<1x1x256xi32>
    %6 = vector.shape_cast %5 : vector<1x1x256xi32> to vector<1x256xi32>
    %c0_6 = arith.constant 0 : index
    %c0_7 = arith.constant 0 : index
    %c0_8 = arith.constant 0 : index
    %7 = vector.load %arg5[%c0_6, %c0_7, %c0_8] : memref<1x9x256xf32, #tpu.memory_space<vmem>>, vector<1x9x256xf32>
    %8 = vector.shape_cast %7 : vector<1x9x256xf32> to vector<9x256xf32>
    %cst = arith.constant dense<0xFF800000> : vector<256xf32>
    %9 = vector.multi_reduction <maximumf>, %4, %cst [0] : vector<10x256xf32> to vector<256xf32>
    %10 = vector.shape_cast %9 : vector<256xf32> to vector<1x256xf32>
    %11 = vector.broadcast %10 : vector<1x256xf32> to vector<10x256xf32>
    %12 = arith.subf %4, %11 : vector<10x256xf32>
    %13 = math.exp %12 : vector<10x256xf32>
    %cst_9 = arith.constant dense<0.000000e+00> : vector<256xf32>
    %14 = vector.multi_reduction <add>, %13, %cst_9 [0] : vector<10x256xf32> to vector<256xf32>
    %15 = vector.shape_cast %14 : vector<256xf32> to vector<1x256xf32>
    %16 = tpu.reciprocal %15 : vector<1x256xf32> -> vector<1x256xf32>
    %17 = vector.broadcast %16 : vector<1x256xf32> to vector<10x256xf32>
    %18 = arith.mulf %13, %17 : vector<10x256xf32>
    %19 = math.log %15 : vector<1x256xf32>
    %20 = vector.broadcast %19 : vector<1x256xf32> to vector<10x256xf32>
    %21 = arith.subf %12, %20 : vector<10x256xf32>
    %22 = tpu.iota {dimensions = array<i32: 0>} : vector<10x256xi32>
    %23 = vector.broadcast %6 : vector<1x256xi32> to vector<10x256xi32>
    %24 = arith.cmpi eq, %22, %23 : vector<10x256xi32>
    %25 = arith.extui %24 : vector<10x256xi1> to vector<10x256xi32>
    %26 = arith.sitofp %25 : vector<10x256xi32> to vector<10x256xf32>
    %cst_10 = arith.constant 2.000000e+00 : f32
    %27 = vector.broadcast %cst_10 : f32 to vector<10x256xf32>
    %28 = arith.mulf %27, %26 : vector<10x256xf32>
    %cst_11 = arith.constant 1.000000e+00 : f32
    %29 = vector.broadcast %cst_11 : f32 to vector<10x256xf32>
    %30 = arith.subf %29, %28 : vector<10x256xf32>
    %31 = arith.mulf %4, %30 : vector<10x256xf32>
    %32 = math.absf %31 : vector<10x256xf32>
    %cst_12 = arith.constant 0.000000e+00 : f32
    %33 = vector.broadcast %cst_12 : f32 to vector<10x256xf32>
    %34 = arith.subf %33, %32 : vector<10x256xf32>
    %35 = math.exp %34 : vector<10x256xf32>
    %cst_13 = arith.constant 1.000000e+00 : f32
    %36 = vector.broadcast %cst_13 : f32 to vector<10x256xf32>
    %37 = arith.addf %36, %35 : vector<10x256xf32>
    %38 = tpu.reciprocal %37 : vector<10x256xf32> -> vector<10x256xf32>
    %cst_14 = arith.constant 0.000000e+00 : f32
    %39 = vector.broadcast %cst_14 : f32 to vector<10x256xf32>
    %40 = arith.maximumf %31, %39 : vector<10x256xf32>
    %cst_15 = arith.constant 1.000000e+00 : f32
    %41 = vector.broadcast %cst_15 : f32 to vector<10x256xf32>
    %42 = arith.addf %41, %35 : vector<10x256xf32>
    %43 = math.log %42 : vector<10x256xf32>
    %44 = arith.addf %40, %43 : vector<10x256xf32>
    %cst_16 = arith.constant 0.000000e+00 : f32
    %45 = vector.broadcast %cst_16 : f32 to vector<10x256xf32>
    %46 = arith.cmpf oge, %31, %45 : vector<10x256xf32>
    %cst_17 = arith.constant 1.000000e+00 : f32
    %47 = vector.broadcast %cst_17 : f32 to vector<10x256xf32>
    %48 = arith.select %46, %47, %35 : vector<10x256xi1>, vector<10x256xf32>
    %49 = arith.mulf %48, %38 : vector<10x256xf32>
    %50 = arith.mulf %49, %49 : vector<10x256xf32>
    %51 = arith.mulf %50, %44 : vector<10x256xf32>
    %c0_18 = arith.constant 0 : index
    %c0_19 = arith.constant 0 : index
    %52 = vector.load %arg7[%c0_18, %c0_19] : memref<10x6xf32, #tpu.memory_space<vmem>>, vector<10x1xf32>
    %53 = arith.mulf %18, %26 : vector<10x256xf32>
    %cst_20 = arith.constant dense<0.000000e+00> : vector<10xf32>
    %54 = vector.multi_reduction <add>, %53, %cst_20 [1] : vector<10x256xf32> to vector<10xf32>
    %55 = vector.shape_cast %54 : vector<10xf32> to vector<10x1xf32>
    %56 = arith.addf %52, %55 : vector<10x1xf32>
    %c0_21 = arith.constant 0 : index
    %c0_22 = arith.constant 0 : index
    %57 = vector.load %arg7[%c0_21, %c0_22] : memref<10x6xf32, #tpu.memory_space<vmem>>, vector<10x1xf32>
    tpu.vector_store %arg7[%c0_21, %c0_22], %56 {strides = array<i32>} : memref<10x6xf32, #tpu.memory_space<vmem>>, vector<10x1xf32>,
    %c0_23 = arith.constant 0 : index
    %c1 = arith.constant 1 : index
    %58 = vector.load %arg7[%c0_23, %c1] : memref<10x6xf32, #tpu.memory_space<vmem>>, vector<10x1xf32>
    %cst_24 = arith.constant dense<0.000000e+00> : vector<10xf32>
    %59 = vector.multi_reduction <add>, %18, %cst_24 [1] : vector<10x256xf32> to vector<10xf32>
    %60 = vector.shape_cast %59 : vector<10xf32> to vector<10x1xf32>
    %61 = arith.addf %58, %60 : vector<10x1xf32>
    %c0_25 = arith.constant 0 : index
    %c1_26 = arith.constant 1 : index
    %62 = vector.load %arg7[%c0_25, %c1_26] : memref<10x6xf32, #tpu.memory_space<vmem>>, vector<10x1xf32>
    tpu.vector_store %arg7[%c0_25, %c1_26], %61 {strides = array<i32>} : memref<10x6xf32, #tpu.memory_space<vmem>>, vector<10x1xf32>,
    %c0_27 = arith.constant 0 : index
    %c2 = arith.constant 2 : index
    %63 = vector.load %arg7[%c0_27, %c2] : memref<10x6xf32, #tpu.memory_space<vmem>>, vector<10x1xf32>
    %cst_28 = arith.constant dense<0.000000e+00> : vector<10xf32>
    %64 = vector.multi_reduction <add>, %26, %cst_28 [1] : vector<10x256xf32> to vector<10xf32>
    %65 = vector.shape_cast %64 : vector<10xf32> to vector<10x1xf32>
    %66 = arith.addf %63, %65 : vector<10x1xf32>
    %c0_29 = arith.constant 0 : index
    %c2_30 = arith.constant 2 : index
    %67 = vector.load %arg7[%c0_29, %c2_30] : memref<10x6xf32, #tpu.memory_space<vmem>>, vector<10x1xf32>
    tpu.vector_store %arg7[%c0_29, %c2_30], %66 {strides = array<i32>} : memref<10x6xf32, #tpu.memory_space<vmem>>, vector<10x1xf32>,
    %c0_31 = arith.constant 0 : index
    %c3 = arith.constant 3 : index
    %68 = vector.load %arg7[%c0_31, %c3] : memref<10x6xf32, #tpu.memory_space<vmem>>, vector<10x1xf32>
    %69 = arith.mulf %26, %21 : vector<10x256xf32>
    %cst_32 = arith.constant dense<0.000000e+00> : vector<10xf32>
    %70 = vector.multi_reduction <add>, %69, %cst_32 [1] : vector<10x256xf32> to vector<10xf32>
    %71 = vector.shape_cast %70 : vector<10xf32> to vector<10x1xf32>
    %cst_33 = arith.constant 0.000000e+00 : f32
    %72 = vector.broadcast %cst_33 : f32 to vector<10x1xf32>
    %73 = arith.subf %72, %71 : vector<10x1xf32>
    %74 = arith.addf %68, %73 : vector<10x1xf32>
    %c0_34 = arith.constant 0 : index
    %c3_35 = arith.constant 3 : index
    %75 = vector.load %arg7[%c0_34, %c3_35] : memref<10x6xf32, #tpu.memory_space<vmem>>, vector<10x1xf32>
    tpu.vector_store %arg7[%c0_34, %c3_35], %74 {strides = array<i32>} : memref<10x6xf32, #tpu.memory_space<vmem>>, vector<10x1xf32>,
    %c0_36 = arith.constant 0 : index
    %c4 = arith.constant 4 : index
    %76 = vector.load %arg7[%c0_36, %c4] : memref<10x6xf32, #tpu.memory_space<vmem>>, vector<10x1xf32>
    %cst_37 = arith.constant dense<0.000000e+00> : vector<10xf32>
    %77 = vector.multi_reduction <add>, %51, %cst_37 [1] : vector<10x256xf32> to vector<10xf32>
    %78 = vector.shape_cast %77 : vector<10xf32> to vector<10x1xf32>
    %79 = arith.addf %76, %78 : vector<10x1xf32>
    %c0_38 = arith.constant 0 : index
    %c4_39 = arith.constant 4 : index
    %80 = vector.load %arg7[%c0_38, %c4_39] : memref<10x6xf32, #tpu.memory_space<vmem>>, vector<10x1xf32>
    tpu.vector_store %arg7[%c0_38, %c4_39], %79 {strides = array<i32>} : memref<10x6xf32, #tpu.memory_space<vmem>>, vector<10x1xf32>,
    %c0_40 = arith.constant 0 : index
    %c5 = arith.constant 5 : index
    %81 = vector.load %arg7[%c0_40, %c5] : memref<10x6xf32, #tpu.memory_space<vmem>>, vector<9x1xf32>
    %82 = vector.extract_strided_slice %18 {offsets = [1, 0], sizes = [9, 256], strides = [1, 1]} : vector<10x256xf32> to vector<9x256xf32>
    %83 = arith.mulf %82, %8 : vector<9x256xf32>
    %cst_41 = arith.constant dense<0.000000e+00> : vector<9xf32>
    %84 = vector.multi_reduction <add>, %83, %cst_41 [1] : vector<9x256xf32> to vector<9xf32>
    %85 = vector.shape_cast %84 : vector<9xf32> to vector<9x1xf32>
    %86 = arith.addf %81, %85 : vector<9x1xf32>
    %c0_42 = arith.constant 0 : index
    %c5_43 = arith.constant 5 : index
    %87 = vector.load %arg7[%c0_42, %c5_43] : memref<10x6xf32, #tpu.memory_space<vmem>>, vector<9x1xf32>
    tpu.vector_store %arg7[%c0_42, %c5_43], %86 {strides = array<i32>} : memref<10x6xf32, #tpu.memory_space<vmem>>, vector<9x1xf32>,
    %c0_i32_44 = arith.constant 0 : i32
    %88 = arith.cmpi eq, %arg2, %c0_i32_44 : i32
    %89 = arith.extui %88 : i1 to i32
    %c0_i32_45 = arith.constant 0 : i32
    %90 = arith.cmpi ne, %89, %c0_i32_45 : i32
    scf.if %90 {
      %c0_46 = arith.constant 0 : index
      %c0_47 = arith.constant 0 : index
      %91 = vector.load %arg7[%c0_46, %c0_47] : memref<10x6xf32, #tpu.memory_space<vmem>>, vector<10x6xf32>
      %c0_48 = arith.constant 0 : index
      %c0_49 = arith.constant 0 : index
      %c0_50 = arith.constant 0 : index
      %c0_51 = arith.constant 0 : index
      %92 = vector.load %arg6[%c0_48, %c0_49, %c0_50, %c0_51] : memref<1x1x10x6xf32, #tpu.memory_space<vmem>>, vector<1x1x10x6xf32>
      %93 = vector.shape_cast %92 : vector<1x1x10x6xf32> to vector<10x6xf32>
      %94 = vector.shape_cast %91 : vector<10x6xf32> to vector<1x1x10x6xf32>
      tpu.vector_store %arg6[%c0_48, %c0_49, %c0_50, %c0_51], %94 {strides = array<i32>} : memref<1x1x10x6xf32, #tpu.memory_space<vmem>>, vector<1x1x10x6xf32>,
    } else {
    }
    return
  }
  func.func @transform_0(%arg0: i32, %arg1: i32, %arg2: i32) -> (i32, i32, i32) {
    %c1_i32 = arith.constant 1 : i32
    %0 = arith.muli %arg1, %c1_i32 : i32
    %1 = arith.addi %0, %arg2 : i32
    %c0_i32 = arith.constant 0 : i32
    %c0_i32_0 = arith.constant 0 : i32
    return %arg0, %c0_i32, %1 : i32, i32, i32
  }
  func.func @transform_1(%arg0: i32, %arg1: i32, %arg2: i32) -> (i32, i32, i32) {
    %c1_i32 = arith.constant 1 : i32
    %0 = arith.muli %arg1, %c1_i32 : i32
    %1 = arith.addi %0, %arg2 : i32
    %c0_i32 = arith.constant 0 : i32
    %c0_i32_0 = arith.constant 0 : i32
    return %arg0, %c0_i32, %1 : i32, i32, i32
  }
  func.func @transform_2(%arg0: i32, %arg1: i32, %arg2: i32) -> (i32, i32, i32) {
    %c1_i32 = arith.constant 1 : i32
    %0 = arith.muli %arg1, %c1_i32 : i32
    %1 = arith.addi %0, %arg2 : i32
    %c0_i32 = arith.constant 0 : i32
    %c0_i32_0 = arith.constant 0 : i32
    return %arg0, %c0_i32, %1 : i32, i32, i32
  }
  func.func @transform_3(%arg0: i32, %arg1: i32, %arg2: i32) -> (i32, i32, i32, i32) {
    %c0_i32 = arith.constant 0 : i32
    %c0_i32_0 = arith.constant 0 : i32
    %c0_i32_1 = arith.constant 0 : i32
    return %arg0, %arg1, %c0_i32, %c0_i32_0 : i32, i32, i32, i32
  }
}

</mosaic_0001>

<bundles_post_ra>
// kernel: multiple_loss_forward.1
= control target key start
LH: loop header
LB: loop body
LE: loop exit
PB: predicated region body
PF: predicated region fallthrough
CT: control target
= control target key end

     0   :  { %s878_s12 = smov 0   ;;  %s880_s13 = smov 0   ;;  %s1055_s0 = inlined_call_operand.vmem [shape: f32[2,10,256], index: 0, kind: input, shape index: {}]   ;;  %s1056_s1 = inlined_call_operand.vmem [shape: s32[2,1,256], index: 1, kind: input, shape index: {}]   ;;  %s1057_s2 = inlined_call_operand.vmem [shape: f32[2,9,256], index: 2, kind: input, shape index: {}]   ;;  %s1058_s3 = inlined_call_operand.vmem [shape: f32[2,1,10,6], index: 3, kind: output, shape index: {}]  }
   0x1   :  { %s882_s14 = smov 0  }
   0x2 LB: > { %s32_s15 = sadd.s32 1, %s851_s13  ;;  %p751_p0 = scmp.ge.s32.totalorder %s855_s14, 1  ;;  %s855_s14 = sphi %s882_s14, %s13_s14   ;;  %s851_s13 = sphi %s880_s13, %s1060_s13   ;;  %s847_s12 = sphi %s878_s12, %s1059_s12  }
   0x3   : > { %p34_p1 = scmp.ge.s32.totalorder %s32_s15, 2  ;;  %p210_p2 = scmp.lt.s32.totalorder %s855_s14, 3 }
   0x5   : > { %s1062_s15 = smov (%p34_p1, %s32_s15), 0  ;;  %p211_p3 = pnand %p751_p0, %p210_p2 }
   0x6   : > { %p264_p4 = scmp.lt.s32.totalorder (!%p211_p3), %s847_s12, 1 }
   0x7   : > { %214 = sbr.rel (%p211_p3) target bundleno = 290 (0x122), region = 32 }
   0xc   : > { %v382_v0 = vlaneseq  ;;  %vm310_vm0 = vcmask 48128   ;;  %s1064_s12 = smov (!%p264_p4, %s847_s12), 1  ;;  %v857_v2 = vmov 0.0   ;;  %vm323_vm1 = vcmask 1041408  }
   0xd   : > { %311 = vst.msk [vmem:[#allocation2] sm:$0xff] %vm310_vm0, %v857_v2  ;;  %s765_s16 = sshll.u32 %s1064_s12, 5  ;;  %s754_s17 = sshll.u32 %s1064_s12, 1  ;;  %vm573_vm10 = vcmask 1040384   ;;  %vm312_vm11 = vcmask 41984   ;;  %vm588_vm12 = vcmask 1047553  }
   0xe   : > { %v383_v1 = vshrl.u32 %v382_v0, 7  ;;  %s271_s20 = scalar_lea.vmem %s1055_s0, %s765_s16  ;;  %s282_s23 = scalar_lea.vmem %s1056_s1, %s754_s17  ;;  %313 = vst.msk [vmem:[#allocation2 + $0x8] sm:$0x3] %vm312_vm11, %v857_v2  ;;  %vm493_vm13 = vcmask 7168   ;;  %vm495_vm14 = vcmask 1024   ;;  %vm509_vm15 = vcmask 15368  }
   0xf   : > { %v314_v5 = vld [vmem:[%s271_s20] sm:$0xff]  ;;  %v315_v6 = vld [vmem:[%s271_s20 + $0x8] sm:$0xff]  ;;  %v316_v7 = vld [vmem:[%s271_s20 + $0x10] sm:$0x3]  ;;  %s294_s26 = scalar_lea.vmem %s1057_s2, %s765_s16  ;;  %s767_s27 = sshll.u32 %s1064_s12, 4 }
  0x10   : > { %v387_v3 = vsub.s32 0, %v383_v1  ;;  %v391_v4 = vsub.s32 1, %v383_v1  ;;  %v384_v8 = vadd.s32 8, %v383_v1  ;;  %v317_v9 = vld [vmem:[%s271_s20 + $0x18] sm:$0x3]  ;;  %v324_v11 = vsel %vm323_vm1, %v316_v7, -inf  ;;  %s305_s30 = scalar_lea.vmem %s1058_s3, %s767_s27 }
  0x11   : > { %v318_v10 = vld [vmem:[%s282_s23] sm:$0x3]  ;;  %v325_v12 = vmax.f32 %v314_v5, %v324_v11  ;;  %v332_v13 = vsel %vm323_vm1, %v317_v9, -inf }
  0x12   : > { %v388_v14 = vrot.slane %v318_v10, %v387_v3  ;;  %v392_v15 = vrot.slane %v318_v10, %v391_v4  ;;  %v333_v16 = vmax.f32 %v315_v6, %v332_v13 }
  0x13   : > { %v326_v17 = vrot.slane %v325_v12, 4 }
  0x14   : > { %vm393_vm2 = vcmp.eq.s32.totalorder %v383_v1, %v388_v14  ;;  %vm394_vm3 = vcmp.eq.s32.totalorder %v383_v1, %v392_v15  ;;  %vm395_vm4 = vcmp.eq.s32.totalorder %v384_v8, %v388_v14  ;;  %v334_v18 = vrot.slane %v333_v16, 4 }
  0x15   : > { %v913_v19 = vsel %vm393_vm2, 1.0, %v857_v2  ;;  %v916_v20 = vsel %vm394_vm3, 1.0, %v857_v2  ;;  %vm396_vm5 = vcmp.eq.s32.totalorder %v384_v8, %v392_v15  ;;  %v327_v21 = vmax.f32 %v325_v12, %v326_v17 }
  0x16   : > { %v405_v22 = vmul.f32 2.0, %v913_v19  ;;  %v406_v23 = vmul.f32 2.0, %v916_v20  ;;  %v921_v24 = vsel %vm395_vm4, 1.0, %v857_v2  ;;  %v335_v25 = vmax.f32 %v333_v16, %v334_v18 }
  0x17   : > { %v924_v26 = vsel %vm396_vm5, 1.0, %v857_v2  ;;  %v407_v27 = vmul.f32 2.0, %v921_v24  ;;  %v328_v28 = vrot.slane %v327_v21, 2  ;;  %vm525_vm2 = vcmask 23568  }
  0x18   : > { %v409_v29 = vsub.f32 1.0, %v405_v22  ;;  %v410_v30 = vsub.f32 1.0, %v406_v23  ;;  %v408_v31 = vmul.f32 2.0, %v924_v26  ;;  %v336_v32 = vrot.slane %v335_v25, 2 }
  0x19   : > { %v411_v33 = vsub.f32 1.0, %v407_v27  ;;  %v329_v34 = vmax.f32 %v327_v21, %v328_v28  ;;  %vm527_vm3 = vcmask 17424   ;;  %vm547_vm4 = vcmask 31768  }
  0x1a   : > { %v412_v35 = vsub.f32 1.0, %v408_v31  ;;  %v928_v36 = vmul.f32 %v409_v29, %v314_v5  ;;  %v337_v37 = vmax.f32 %v335_v25, %v336_v32  ;;  %v930_v38 = vmul.f32 %v410_v30, %v315_v6 }
  0x1b   : > { %v932_v39 = vmul.f32 %v411_v33, %v316_v7  ;;  %v330_v40 = vrot.slane %v329_v34, 1  ;;  %vm549_vm5 = vcmask 25624  }
  0x1c   : > { %v417_v41 = vand.u32 2147483647, %v928_v36  ;;  %v338_v42 = vrot.slane %v337_v37, 1  ;;  %v418_v43 = vand.u32 2147483647, %v930_v38  ;;  %v936_v46 = vmul.f32 %v412_v35, %v317_v9 }
  0x1d   : > { %v331_v44 = vmax.f32 %v329_v34, %v330_v40  ;;  %v419_v49 = vand.u32 2147483647, %v932_v39  ;;  %vm457_vm6 = vcmp.ge.f32.partialorder %v928_v36, 0.0  ;;  %vm458_vm7 = vcmp.ge.f32.partialorder %v930_v38, 0.0 }
  0x1e   : > { %v421_v45 = vsub.f32 0.0, %v417_v41  ;;  %v339_v47 = vmax.f32 %v337_v37, %v338_v42  ;;  %v422_v48 = vsub.f32 0.0, %v418_v43  ;;  %v420_v53 = vand.u32 2147483647, %v936_v46  ;;  %v971_v37 = vld [vmem:[%s294_s26] sm:$0xff]  ;;  %v975_v41 = vld [vmem:[%s294_s26 + $0x8] sm:$0xff] }
  0x1f   : > { %v939_v50 = vsub.f32 %v314_v5, %v331_v44  ;;  %v941_v51 = vsub.f32 %v316_v7, %v331_v44  ;;  %v423_v60 = vsub.f32 0.0, %v419_v49  ;;  %v977_v42 = vld [vmem:[%s294_s26 + $0x10] sm:$0x1]  ;;  %vm459_vm8 = vcmp.ge.f32.partialorder %v932_v39, 0.0 }
  0x20   : > { %v425_v52 = vmul.f32 1.442695, %v421_v45  ;;  %v944_v54 = vsub.f32 %v315_v6, %v339_v47  ;;  %v946_v55 = vsub.f32 %v317_v9, %v339_v47  ;;  %v427_v61 = vmul.f32 1.442695, %v422_v48 }
  0x21   : > { %v344_v56 = vmul.f32 1.442695, %v939_v50  ;;  %v348_v57 = vmul.f32 1.442695, %v941_v51  ;;  %v424_v62 = vsub.f32 0.0, %v420_v53  ;;  %vm460_vm9 = vcmp.ge.f32.partialorder %v936_v46, 0.0 }
  0x22   : > { %v346_v58 = vmul.f32 1.442695, %v944_v54  ;;  %v350_v59 = vmul.f32 1.442695, %v946_v55  ;;  %793 = vpow2.f32 %v425_v52  ;;  %v429_v63 = vmul.f32 1.442695, %v423_v60 }
  0x23   : > { %795 = vpow2.f32 %v344_v56  ;;  %v431_v0 = vmul.f32 1.442695, %v424_v62  ;;  %v574_v45 = vrot.slane %v971_v37, 7  ;;  %v982_v52 = vld [vmem:[%s294_s26 + $0x18] sm:$0x1]  ;;  %v575_v53 = vrot.slane %v975_v41, 7 }
  0x24   : > { %797 = vpow2.f32 %v346_v58  ;;  %v576_v56 = vrot.slane %v977_v42, 7  ;;  %v518_v58 = vsel %vm323_vm1, %v921_v24, 0.0  ;;  %v477_v37 = vld [vmem:[#allocation2] sm:$0xff] }
  0x25   : > { %799 = vpow2.f32 %v348_v57 }
  0x26   : > { %801 = vpow2.f32 %v350_v59  ;;  %v519_v59 = vsel %vm323_vm1, %v924_v26, 0.0 }
  0x27   : > { %803 = vpow2.f32 %v427_v61 }
  0x28   : > { %805 = vpow2.f32 %v429_v63  ;;  %v441_v63 = vmax.f32 %v928_v36, 0.0 }
  0x29   : > { %807 = vpow2.f32 %v431_v0  ;;  %v442_v0 = vmax.f32 %v930_v38, 0.0 }
  0x2f   : > { %v794_v1 = vpop.eup %793 }
  0x30   : > { %v952_v3 = vpop.eup %795  ;;  %v433_v13 = vadd.f32 1.0, %v794_v1  ;;  %v461_v48 = vsel %vm457_vm6, 1.0, %v794_v1  ;;  %v443_v1 = vmax.f32 %v932_v39, 0.0  ;;  %vm563_vm6 = vcmask 39968  }
  0x31   : > { %v954_v4 = vpop.eup %797 }
  0x32   : > { %v956_v5 = vpop.eup %799  ;;  %809 = vrcp.f32 %v433_v13 }
  0x33   : > { %v958_v6 = vpop.eup %801  ;;  %v352_v7 = vsel %vm323_vm1, %v956_v5, 0.0 }
  0x34   : > { %v804_v8 = vpop.eup %803  ;;  %v353_v9 = vadd.f32 %v952_v3, %v352_v7  ;;  %v360_v10 = vsel %vm323_vm1, %v958_v6, 0.0  ;;  %v444_v7 = vmax.f32 %v936_v46, 0.0 }
  0x35   : > { %v361_v11 = vadd.f32 %v954_v4, %v360_v10  ;;  %v806_v14 = vpop.eup %805  ;;  %v434_v16 = vadd.f32 1.0, %v804_v8  ;;  %v462_v49 = vsel %vm458_vm7, 1.0, %v804_v8  ;;  %vm565_vm7 = vcmask 33824  }
  0x36   : > { %v354_v12 = vrot.slane %v353_v9, 4  ;;  %v808_v17 = vpop.eup %807  ;;  %v435_v23 = vadd.f32 1.0, %v806_v14  ;;  %v463_v60 = vsel %vm459_vm8, 1.0, %v806_v14  ;;  %vm601_vm8 = vcmask 1046528  }
  0x37   : > { %v362_v15 = vrot.slane %v361_v11, 4  ;;  %811 = vrcp.f32 %v434_v16  ;;  %v436_v27 = vadd.f32 1.0, %v808_v17  ;;  %v464_v61 = vsel %vm460_vm9, 1.0, %v808_v17 }
  0x38   : > { %v355_v18 = vadd.f32 %v354_v12, %v353_v9  ;;  %813 = vlog2.f32 %v433_v13  ;;  %v578_v12 = vrot.slane %v982_v52, 7  ;;  %vm609_vm9 = vcmask 48168  }
  0x39   : > { %v363_v21 = vadd.f32 %v362_v15, %v361_v11  ;;  %815 = vlog2.f32 %v434_v16 }
  0x3a   : > { %v356_v22 = vrot.slane %v355_v18, 2  ;;  %817 = vrcp.f32 %v435_v23 }
  0x3b   : > { %v364_v25 = vrot.slane %v363_v21, 2  ;;  %819 = vrcp.f32 %v436_v27 }
  0x3c   : > { %v357_v28 = vadd.f32 %v356_v22, %v355_v18  ;;  %821 = vlog2.f32 %v435_v23 }
  0x3d   : > { %v365_v29 = vadd.f32 %v364_v25, %v363_v21  ;;  %823 = vlog2.f32 %v436_v27 }
  0x3e   : > { %v358_v30 = vrot.slane %v357_v28, 1 }
  0x3f   : > { %v366_v31 = vrot.slane %v365_v29, 1  ;;  %v810_v34 = vpop.eup %809 }
  0x40   : > { %v359_v32 = vadd.f32 %v358_v30, %v357_v28  ;;  %v465_v10 = vmul.f32 %v810_v34, %v461_v48 }
  0x41   : > { %v367_v33 = vadd.f32 %v366_v31, %v365_v29 }
  0x42   : > { %825 = vrcp.f32 %v359_v32 }
  0x43   : > { %827 = vrcp.f32 %v367_v33 }
  0x44   : > { %829 = vlog2.f32 %v359_v32  ;;  %v812_v35 = vpop.eup %811 }
  0x45   : > { %831 = vlog2.f32 %v367_v33  ;;  %v814_v40 = vpop.eup %813  ;;  %v466_v11 = vmul.f32 %v812_v35, %v462_v49 }
  0x46   : > { %v816_v43 = vpop.eup %815  ;;  %v446_v9 = vmul.f32 0.6931472, %v814_v40 }
  0x47   : > { %v818_v44 = vpop.eup %817  ;;  %v448_v30 = vmul.f32 0.6931472, %v816_v43 }
  0x48   : > { %v820_v47 = vpop.eup %819  ;;  %v467_v36 = vmul.f32 %v818_v44, %v463_v60  ;;  %v520_v60 = vadd.f32 %v519_v59, %v518_v58  ;;  %v453_v59 = vadd.f32 %v446_v9, %v441_v63 }
  0x49   : > { %v822_v57 = vpop.eup %821  ;;  %v468_v16 = vmul.f32 %v820_v47, %v464_v61 }
  0x4a   : > { %v824_v62 = vpop.eup %823  ;;  %v450_v17 = vmul.f32 0.6931472, %v822_v57  ;;  %v471_v31 = vmul.f32 %v467_v36, %v467_v36  ;;  %v515_v57 = vadd.f32 %v916_v20, %v913_v19 }
  0x4b   : > { %v452_v18 = vmul.f32 0.6931472, %v824_v62  ;;  %v472_v47 = vmul.f32 %v468_v16, %v468_v16  ;;  %v577_v62 = vsel %vm573_vm10, %v574_v45, %v576_v56 }
  0x4c   : > { %v455_v42 = vadd.f32 %v450_v17, %v443_v1 }
  0x4d   : > { %v456_v44 = vadd.f32 %v452_v18, %v444_v7 }
  0x4e   : > { %v475_v1 = vmul.f32 %v471_v31, %v455_v42 }
  0x4f   : > { %v826_v8 = vpop.eup %825  ;;  %v476_v7 = vmul.f32 %v472_v47, %v456_v44 }
  0x50   : > { %v828_v13 = vpop.eup %827  ;;  %v996_v14 = vmul.f32 %v826_v8, %v952_v3  ;;  %v372_v15 = vmul.f32 %v826_v8, %v956_v5  ;;  %v454_v8 = vadd.f32 %v448_v30, %v442_v0 }
  0x51   : > { %v830_v38 = vpop.eup %829  ;;  %v371_v39 = vmul.f32 %v828_v13, %v954_v4  ;;  %v373_v46 = vmul.f32 %v828_v13, %v958_v6 }
  0x52   : > { %v832_v21 = vpop.eup %831  ;;  %v479_v22 = vmul.f32 %v913_v19, %v996_v14  ;;  %v481_v23 = vmul.f32 %v921_v24, %v372_v15  ;;  %v502_v3 = vsel %vm323_vm1, %v372_v15, 0.0  ;;  %v375_v25 = vmul.f32 0.6931472, %v830_v38 }
  0x53   : > { %v480_v5 = vmul.f32 %v916_v20, %v371_v39  ;;  %v482_v27 = vmul.f32 %v924_v26, %v373_v46  ;;  %v499_v28 = vadd.f32 %v371_v39, %v996_v14  ;;  %v503_v4 = vsel %vm323_vm1, %v373_v46, 0.0 }
  0x54   : > { %v486_v6 = vsel %vm323_vm1, %v481_v23, 0.0  ;;  %v377_v29 = vmul.f32 0.6931472, %v832_v21  ;;  %v504_v34 = vadd.f32 %v503_v4, %v502_v3  ;;  %v380_v35 = vsub.f32 %v941_v51, %v375_v25 }
  0x55   : > { %v483_v32 = vadd.f32 %v480_v5, %v479_v22  ;;  %v487_v33 = vsel %vm323_vm1, %v482_v27, 0.0  ;;  %500 = vadd.xlane.f32.xlu1 %v499_v28  ;;  %v378_v49 = vsub.f32 %v939_v50, %v375_v25  ;;  %v469_v51 = vmul.f32 %v465_v10, %v465_v10 }
  0x56   : > { %v381_v40 = vsub.f32 %v946_v55, %v377_v29  ;;  %v488_v48 = vadd.f32 %v487_v33, %v486_v6  ;;  %v379_v52 = vsub.f32 %v944_v54, %v377_v29  ;;  %v533_v43 = vmul.f32 %v921_v24, %v380_v35 }
  0x57   : > { %484 = vadd.xlane.f32.xlu0 %v483_v32  ;;  %v470_v55 = vmul.f32 %v466_v11, %v466_v11  ;;  %v579_v50 = vsel %vm573_vm10, %v575_v53, %v578_v12  ;;  %v556_v10 = vsel %vm323_vm1, %v475_v1, 0.0  ;;  %v557_v11 = vsel %vm323_vm1, %v476_v7, 0.0 }
  0x58   : > { %v534_v61 = vmul.f32 %v924_v26, %v381_v40  ;;  %v538_v54 = vsel %vm323_vm1, %v533_v43, 0.0  ;;  %v531_v26 = vmul.f32 %v913_v19, %v378_v49  ;;  %v532_v58 = vmul.f32 %v916_v20, %v379_v52 }
  0x59   : > { %505 = vadd.xlane.f32.xlu1 %v504_v34  ;;  %v586_v12 = vmul.f32 %v577_v62, %v372_v15  ;;  %v587_v13 = vmul.f32 %v579_v50, %v373_v46  ;;  %v473_v16 = vmul.f32 %v469_v51, %v453_v59  ;;  %v474_v19 = vmul.f32 %v470_v55, %v454_v8 }
  0x5a   : > { %v539_v24 = vsel %vm323_vm1, %v534_v61, 0.0  ;;  %v535_v36 = vadd.f32 %v532_v58, %v531_v26  ;;  %v584_v20 = vmul.f32 %v574_v45, %v996_v14  ;;  %v585_v63 = vmul.f32 %v575_v53, %v371_v39  ;;  %v478_v53 = vld [vmem:[#allocation2 + $0x8] sm:$0x3] }
  0x5b   : > { %489 = vadd.xlane.f32.xlu0 %v488_v48  ;;  %v540_v56 = vadd.f32 %v539_v24, %v538_v54  ;;  %v558_v0 = vadd.f32 %v557_v11, %v556_v10  ;;  %v594_v2 = vsel %vm323_vm1, %v586_v12, 0.0  ;;  %v595_v9 = vsel %vm323_vm1, %v587_v13, 0.0 }
  0x5c   : > { %v553_v15 = vadd.f32 %v474_v19, %v473_v16  ;;  %v589_v38 = vsel %vm588_vm12, %v584_v20, 0.0  ;;  %v590_v46 = vsel %vm588_vm12, %v585_v63, 0.0  ;;  %v596_v17 = vadd.f32 %v595_v9, %v594_v2 }
  0x5d   : > { %521 = vadd.xlane.f32.xlu1 %v520_v60  ;;  %v591_v18 = vadd.f32 %v590_v46, %v589_v38  ;;  %vm511_vm1 = vcmask 9224   ;;  %vm611_vm10 = vcmask 41000  }
  0x5f   : > { %516 = vadd.xlane.f32.xlu0 %v515_v57 }
  0x61   : > { %541 = vadd.xlane.f32.xlu1 %v540_v56 }
  0x63   : > { %536 = vadd.xlane.f32.xlu0 %v535_v36 }
  0x65   : > { %559 = vadd.xlane.f32.xlu1 %v558_v0 }
  0x67   : > { %554 = vadd.xlane.f32.xlu0 %v553_v15 }
  0x69   : > { %597 = vadd.xlane.f32.xlu1 %v596_v17 }
  0x6b   : > { %592 = vadd.xlane.f32.xlu0 %v591_v18 }
  0xde   : > { %v501_v21 = vpop.xlane.xlu1 %500 }
  0xe0   : > { %v485_v41 = vpop.xlane.xlu0 %484 }
  0xe1   : > { %v491_v45 = vadd.f32 %v485_v41, %v477_v37 }
  0xe2   : > { %v506_v3 = vpop.xlane.xlu1 %505 }
  0xe3   : > { %494 = vst.msk [vmem:[#allocation2] sm:$0xff] %vm493_vm13, %v491_v45 }
  0xe4   : > { %v490_v14 = vpop.xlane.xlu0 %489 }
  0xe5   : > { %v492_v39 = vadd.f32 %v490_v14, %v478_v53 }
  0xe6   : > { %v522_v6 = vpop.xlane.xlu1 %521 }
  0xe7   : > { %496 = vst.msk [vmem:[#allocation2 + $0x8] sm:$0x3] %vm495_vm14, %v492_v39 }
  0xe8   : > { %v517_v27 = vpop.xlane.xlu0 %516 }
  0xea   : > { %v497_v22 = vld [vmem:[#allocation2] sm:$0xff]  ;;  %v542_v33 = vpop.xlane.xlu1 %541 }
  0xeb   : > { %v507_v23 = vadd.f32 %v501_v21, %v497_v22  ;;  %v544_v40 = vsub.f32 0.0, %v542_v33 }
  0xec   : > { %v537_v30 = vpop.xlane.xlu0 %536 }
  0xed   : > { %510 = vst.msk [vmem:[#allocation2] sm:$0xff] %vm509_vm15, %v507_v23  ;;  %v543_v32 = vsub.f32 0.0, %v537_v30 }
  0xee   : > { %v498_v25 = vld [vmem:[#allocation2 + $0x8] sm:$0x3]  ;;  %v560_v47 = vpop.xlane.xlu1 %559 }
  0xef   : > { %v508_v5 = vadd.f32 %v506_v3, %v498_v25 }
  0xf0   : > { %v555_v48 = vpop.xlane.xlu0 %554 }
  0xf1   : > { %512 = vst.msk [vmem:[#allocation2 + $0x8] sm:$0x3] %vm511_vm1, %v508_v5 }
  0xf2   : > { %v598_v43 = vpop.xlane.xlu1 %597 }
  0xf3   : > { %v603_v61 = vrot.slane %v598_v43, 1 }
  0xf4   : > { %v513_v28 = vld [vmem:[#allocation2] sm:$0xff]  ;;  %v593_v57 = vpop.xlane.xlu0 %592 }
  0xf5   : > { %v523_v4 = vadd.f32 %v517_v27, %v513_v28  ;;  %v602_v51 = vrot.slane %v593_v57, 1 }
  0xf7   : > { %526 = vst.msk [vmem:[#allocation2] sm:$0xff] %vm525_vm2, %v523_v4  ;;  %v604_v62 = vsel %vm601_vm8, %v602_v51, %v603_v61 }
  0xf8   : > { %v514_v29 = vld [vmem:[#allocation2 + $0x8] sm:$0x3] }
  0xf9   : > { %v524_v31 = vadd.f32 %v522_v6, %v514_v29 }
  0xfb   : > { %528 = vst.msk [vmem:[#allocation2 + $0x8] sm:$0x3] %vm527_vm3, %v524_v31 }
  0xfe   : > { %v529_v34 = vld [vmem:[#allocation2] sm:$0xff] }
  0xff   : > { %v545_v35 = vadd.f32 %v543_v32, %v529_v34 }
 0x101   : > { %548 = vst.msk [vmem:[#allocation2] sm:$0xff] %vm547_vm4, %v545_v35 }
 0x102   : > { %v530_v42 = vld [vmem:[#allocation2 + $0x8] sm:$0x3] }
 0x103   : > { %v546_v44 = vadd.f32 %v544_v40, %v530_v42 }
 0x105   : > { %550 = vst.msk [vmem:[#allocation2 + $0x8] sm:$0x3] %vm549_vm5, %v546_v44 }
 0x108   : > { %v551_v49 = vld [vmem:[#allocation2] sm:$0xff] }
 0x109   : > { %v561_v52 = vadd.f32 %v555_v48, %v551_v49 }
 0x10b   : > { %564 = vst.msk [vmem:[#allocation2] sm:$0xff] %vm563_vm6, %v561_v52 }
 0x10c   : > { %v552_v60 = vld [vmem:[#allocation2 + $0x8] sm:$0x3] }
 0x10d   : > { %v562_v55 = vadd.f32 %v560_v47, %v552_v60 }
 0x10f   : > { %566 = vst.msk [vmem:[#allocation2 + $0x8] sm:$0x3] %vm565_vm7, %v562_v55 }
 0x112   : > { %v567_v50 = vld [vmem:[#allocation2] sm:$0xff] }
 0x113   : > { %v607_v54 = vadd.f32 %v604_v62, %v567_v50 }
 0x115   : > { %610 = vst.msk [vmem:[#allocation2] sm:$0xff] %vm609_vm9, %v607_v54 }
 0x116   : > { %v568_v24 = vld [vmem:[#allocation2 + $0x8] sm:$0x1] }
 0x117   : > { %v608_v1 = vadd.f32 %v603_v61, %v568_v24 }
 0x119   : > { %612 = vst.msk [vmem:[#allocation2 + $0x8] sm:$0x1] %vm611_vm10, %v608_v1 }
 0x11c   : > { %v616_v7 = vld [vmem:[#allocation2] sm:$0xff] }
 0x11d   : > { %619 = vst.msk [vmem:[%s305_s30] sm:$0xff] %vm310_vm0, %v616_v7 }
 0x120   : > { %v617_v26 = vld [vmem:[#allocation2 + $0x8] sm:$0x3] }
 0x121   : > { %621 = vst.msk [vmem:[%s305_s30 + $0x8] sm:$0x3] %vm312_vm11, %v617_v26 }
 0x122 PF: > { %s13_s14 = sadd.s32 1, %s855_s14   ;;  %s1059_s12 = smov %s851_s13 }
 0x123   : > { %p10_p5 = scmp.ge.s32.totalorder %s13_s14, 4   ;;  %s1060_s13 = smov %s1062_s15 }
 0x125   :  { %12 = sbr.rel (!%p10_p5) target bundleno = 2 (0x2), region = 76 }

</bundles_post_ra>
